<compile_context>
chip_gen: v7x
topology: tpu7x:2x2x1
jax: 0.10.0
libtpu: 0.0.40
codegen_flags: <defaults>
</compile_context>

<pallas_src>
import math
import functools

import jax
import jax.numpy as jnp
from jax import lax
from jax.experimental import pallas as pl
from jax.experimental.pallas import tpu as pltpu


def _mha_kernel(q_ref, h_ref, wq_ref, wkv_ref, wo_ref, out_ref, *,
                n_heads, key_dim, val_dim, norm_factor):
    q = q_ref[0]      # (n_query, input_dim), native dtype
    hh = h_ref[0]     # (graph_size, input_dim), native dtype

    # Wide, head-stacked projections (MXU, f32 accumulation).
    q_all = jnp.dot(q, wq_ref[...], preferred_element_type=jnp.float32)       # (nq, H*kd)
    kv_all = jnp.dot(hh, wkv_ref[...], preferred_element_type=jnp.float32)    # (ng, H*kd + H*vd)

    k_width = n_heads * key_dim
    head_outs = []
    for hd in range(n_heads):  # statically unrolled per-head attention
        q_h = q_all[:, hd * key_dim:(hd + 1) * key_dim]                        # (nq, kd)
        k_h = kv_all[:, hd * key_dim:(hd + 1) * key_dim]                       # (ng, kd)
        v_h = kv_all[:, k_width + hd * val_dim:k_width + (hd + 1) * val_dim]   # (ng, vd)

        # Q @ K^T with the transpose folded into the contraction dims.
        scores = norm_factor * lax.dot_general(
            q_h, k_h,
            dimension_numbers=(((1,), (1,)), ((), ())),
            preferred_element_type=jnp.float32)                                # (nq, ng)

        # Numerically-stable softmax; reciprocal on the EUP.
        scores = scores - jnp.max(scores, axis=-1, keepdims=True)
        e = jnp.exp(scores)
        attn = e * pl.reciprocal(jnp.sum(e, axis=-1, keepdims=True), approx=True)

        head_outs.append(
            jnp.dot(attn, v_h, preferred_element_type=jnp.float32))            # (nq, vd)

    heads_cat = jnp.concatenate(head_outs, axis=-1)                            # (nq, H*vd)
    out = jnp.dot(heads_cat, wo_ref[...], preferred_element_type=jnp.float32)  # (nq, ed)
    out_ref[0] = out.astype(out_ref.dtype)


def multi_head_attention(q, h, W_query, W_key, W_val, W_out):
    """q: (B, n_query, input_dim), h: (B, graph_size, input_dim).

    W_query/W_key: (n_heads, input_dim, key_dim), W_val: (n_heads, input_dim, val_dim),
    W_out: (n_heads, key_dim, embed_dim) — identical to the PyTorch parameters.
    """
    B, n_query, input_dim = q.shape
    _, graph_size, _ = h.shape
    n_heads, _, key_dim = W_query.shape
    val_dim = W_val.shape[-1]
    embed_dim = W_out.shape[-1]
    norm_factor = 1.0 / math.sqrt(key_dim)

    # Head-stacked weights (wrapper-side layout plumbing, done once).
    wq_cat = jnp.transpose(W_query, (1, 0, 2)).reshape(input_dim, n_heads * key_dim)
    wk_cat = jnp.transpose(W_key, (1, 0, 2)).reshape(input_dim, n_heads * key_dim)
    wv_cat = jnp.transpose(W_val, (1, 0, 2)).reshape(input_dim, n_heads * val_dim)
    wkv_cat = jnp.concatenate([wk_cat, wv_cat], axis=-1)    # (input_dim, H*kd + H*vd)
    wo_flat = W_out.reshape(n_heads * key_dim, embed_dim)   # matches W_out.view(-1, embed_dim)

    kernel = functools.partial(
        _mha_kernel,
        n_heads=n_heads, key_dim=key_dim, val_dim=val_dim, norm_factor=norm_factor)

    grid_spec = pltpu.PrefetchScalarGridSpec(
        num_scalar_prefetch=0,
        grid=(B,),
        in_specs=[
            pl.BlockSpec((1, n_query, input_dim), lambda b: (b, 0, 0)),
            pl.BlockSpec((1, graph_size, input_dim), lambda b: (b, 0, 0)),
            # Weights: single full block each, DMA'd once, VMEM-resident across b.
            pl.BlockSpec((input_dim, n_heads * key_dim), lambda b: (0, 0)),
            pl.BlockSpec((input_dim, n_heads * (key_dim + val_dim)), lambda b: (0, 0)),
            pl.BlockSpec((n_heads * key_dim, embed_dim), lambda b: (0, 0)),
        ],
        out_specs=pl.BlockSpec((1, n_query, embed_dim), lambda b: (b, 0, 0)),
    )

    return pl.pallas_call(
        kernel,
        out_shape=jax.ShapeDtypeStruct((B, n_query, embed_dim), q.dtype),
        grid_spec=grid_spec,
        compiler_params=pltpu.CompilerParams(
            dimension_semantics=("parallel",)),
    )(q, h, wq_cat, wkv_cat, wo_flat)


def _reference_mha(q, h, W_query, W_key, W_val, W_out, norm_factor):
    # Pure-JAX reference mirroring the PyTorch forward (dropout = identity).
    Q = jnp.einsum("bqi,hik->hbqk", q, W_query)
    K = jnp.einsum("bgi,hik->hbgk", h, W_key)
    V = jnp.einsum("bgi,hiv->hbgv", h, W_val)
    compat = norm_factor * jnp.einsum("hbqk,hbgk->hbqg", Q, K)
    attn = jax.nn.softmax(compat, axis=-1)
    heads = jnp.einsum("hbqg,hbgv->hbqv", attn, V)
    out = jnp.einsum("hbqv,hve->bqe", heads, W_out)
    return out


if __name__ == "__main__":
    # Module config (small but consistent with the forward's assumptions).
    n_heads = 4
    input_dim = 32
    embed_dim = 32
    key_dim = embed_dim // n_heads   # val_dim defaults to embed_dim // n_heads
    val_dim = key_dim

    batch = 2
    graph_size = 8                   # n_query == graph_size since h is None -> h = q

    key = jax.random.PRNGKey(0)
    k_q, k_wq, k_wk, k_wv, k_wo = jax.random.split(key, 5)

    # init_parameters(): uniform(-stdv, stdv) with stdv = 1/sqrt(last dim)
    def init_w(k, shape):
        stdv = 1.0 / math.sqrt(shape[-1])
        return jax.random.uniform(k, shape, jnp.float32, -stdv, stdv)

    W_query = init_w(k_wq, (n_heads, input_dim, key_dim))
    W_key = init_w(k_wk, (n_heads, input_dim, key_dim))
    W_val = init_w(k_wv, (n_heads, input_dim, val_dim))
    W_out = init_w(k_wo, (n_heads, key_dim, embed_dim))

    q = jax.random.normal(k_q, (batch, graph_size, input_dim), jnp.float32)
    h = q  # forward(q, h=None) -> h = q

    out = multi_head_attention(q, h, W_query, W_key, W_val, W_out)
    out = jax.block_until_ready(out)

    ref = _reference_mha(q, h, W_query, W_key, W_val, W_out,
                         1.0 / math.sqrt(key_dim))
    assert out.shape == (batch, graph_size, embed_dim)
    # Tolerance relaxed slightly vs exact f32 because the softmax denominator
    # uses the EUP approximate reciprocal (relative error ~2^-12).
    assert jnp.allclose(out, ref, atol=2e-3, rtol=2e-3), "mismatch vs reference"

    print("KERNEL_OK")
</pallas_src>

<mosaic_0001>
module attributes {stable_mosaic.version = 11 : i64} {
  func.func @_mha_kernel(%arg0: i32, %arg1: memref<1x8x32xf32, #tpu.memory_space<vmem>>, %arg2: memref<1x8x32xf32, #tpu.memory_space<vmem>>, %arg3: memref<32x32xf32, #tpu.memory_space<vmem>>, %arg4: memref<32x64xf32, #tpu.memory_space<vmem>>, %arg5: memref<32x32xf32, #tpu.memory_space<vmem>>, %arg6: memref<1x8x32xf32, #tpu.memory_space<vmem>>) attributes {dimension_semantics = [#tpu.dimension_semantics<parallel>], iteration_bounds = array<i64: 2>, scalar_prefetch = 0 : i64, scratch_operands = 0 : i64, tpu.core_type = #tpu.core_type<tc>, window_params = [{transform_indices = @transform_0, window_bounds = array<i64: 1, 8, 32>}, {transform_indices = @transform_1, window_bounds = array<i64: 1, 8, 32>}, {pipeline_mode = #tpu.pipeline_mode<synchronous>, transform_indices = @transform_2, window_bounds = array<i64: 32, 32>}, {pipeline_mode = #tpu.pipeline_mode<synchronous>, transform_indices = @transform_3, window_bounds = array<i64: 32, 64>}, {pipeline_mode = #tpu.pipeline_mode<synchronous>, transform_indices = @transform_4, window_bounds = array<i64: 32, 32>}, {transform_indices = @transform_5, window_bounds = array<i64: 1, 8, 32>}]} {
    %c0 = arith.constant 0 : index
    %c0_0 = arith.constant 0 : index
    %c0_1 = arith.constant 0 : index
    %0 = vector.load %arg1[%c0, %c0_0, %c0_1] : memref<1x8x32xf32, #tpu.memory_space<vmem>>, vector<1x8x32xf32>
    %1 = vector.shape_cast %0 : vector<1x8x32xf32> to vector<8x32xf32>
    %c0_2 = arith.constant 0 : index
    %c0_3 = arith.constant 0 : index
    %c0_4 = arith.constant 0 : index
    %2 = vector.load %arg2[%c0_2, %c0_3, %c0_4] : memref<1x8x32xf32, #tpu.memory_space<vmem>>, vector<1x8x32xf32>
    %3 = vector.shape_cast %2 : vector<1x8x32xf32> to vector<8x32xf32>
    %c0_5 = arith.constant 0 : index
    %c0_6 = arith.constant 0 : index
    %4 = vector.load %arg3[%c0_5, %c0_6] : memref<32x32xf32, #tpu.memory_space<vmem>>, vector<32x32xf32>
    %cst = arith.constant dense<0.000000e+00> : vector<8x32xf32>
    %5 = tpu.matmul %1, %4, %cst {dimension_numbers = #tpu.dot_dimension_numbers<[1], [0], [0], [1], [0, 0, 1, 1], [], []>} : vector<8x32xf32>, vector<32x32xf32>, vector<8x32xf32> -> vector<8x32xf32>
    %c0_7 = arith.constant 0 : index
    %c0_8 = arith.constant 0 : index
    %6 = vector.load %arg4[%c0_7, %c0_8] : memref<32x64xf32, #tpu.memory_space<vmem>>, vector<32x64xf32>
    %cst_9 = arith.constant dense<0.000000e+00> : vector<8x64xf32>
    %7 = tpu.matmul %3, %6, %cst_9 {dimension_numbers = #tpu.dot_dimension_numbers<[1], [0], [0], [1], [0, 0, 1, 1], [], []>} : vector<8x32xf32>, vector<32x64xf32>, vector<8x64xf32> -> vector<8x64xf32>
    %8 = vector.extract_strided_slice %5 {offsets = [0, 0], sizes = [8, 8], strides = [1, 1]} : vector<8x32xf32> to vector<8x8xf32>
    %9 = vector.extract_strided_slice %7 {offsets = [0, 0], sizes = [8, 8], strides = [1, 1]} : vector<8x64xf32> to vector<8x8xf32>
    %10 = vector.extract_strided_slice %7 {offsets = [0, 32], sizes = [8, 8], strides = [1, 1]} : vector<8x64xf32> to vector<8x8xf32>
    %cst_10 = arith.constant dense<0.000000e+00> : vector<8x8xf32>
    %11 = tpu.matmul %8, %9, %cst_10 {dimension_numbers = #tpu.dot_dimension_numbers<[1], [1], [0], [0], [0, 0, 1, 0], [], []>} : vector<8x8xf32>, vector<8x8xf32>, vector<8x8xf32> -> vector<8x8xf32>
    %cst_11 = arith.constant 0.353553385 : f32
    %12 = vector.broadcast %cst_11 : f32 to vector<8x8xf32>
    %13 = arith.mulf %12, %11 : vector<8x8xf32>
    %cst_12 = arith.constant dense<0xFF800000> : vector<8xf32>
    %14 = vector.multi_reduction <maximumf>, %13, %cst_12 [1] : vector<8x8xf32> to vector<8xf32>
    %15 = vector.shape_cast %14 : vector<8xf32> to vector<8x1xf32>
    %16 = vector.broadcast %15 : vector<8x1xf32> to vector<8x8xf32>
    %17 = arith.subf %13, %16 : vector<8x8xf32>
    %18 = math.exp %17 : vector<8x8xf32>
    %cst_13 = arith.constant dense<0.000000e+00> : vector<8xf32>
    %19 = vector.multi_reduction <add>, %18, %cst_13 [1] : vector<8x8xf32> to vector<8xf32>
    %20 = vector.shape_cast %19 : vector<8xf32> to vector<8x1xf32>
    %21 = tpu.reciprocal %20 {approx = true} : vector<8x1xf32> -> vector<8x1xf32>
    %22 = vector.broadcast %21 : vector<8x1xf32> to vector<8x8xf32>
    %23 = arith.mulf %18, %22 : vector<8x8xf32>
    %cst_14 = arith.constant dense<0.000000e+00> : vector<8x8xf32>
    %24 = tpu.matmul %23, %10, %cst_14 {dimension_numbers = #tpu.dot_dimension_numbers<[1], [0], [0], [1], [0, 0, 1, 1], [], []>} : vector<8x8xf32>, vector<8x8xf32>, vector<8x8xf32> -> vector<8x8xf32>
    %25 = vector.extract_strided_slice %5 {offsets = [0, 8], sizes = [8, 8], strides = [1, 1]} : vector<8x32xf32> to vector<8x8xf32>
    %26 = vector.extract_strided_slice %7 {offsets = [0, 8], sizes = [8, 8], strides = [1, 1]} : vector<8x64xf32> to vector<8x8xf32>
    %27 = vector.extract_strided_slice %7 {offsets = [0, 40], sizes = [8, 8], strides = [1, 1]} : vector<8x64xf32> to vector<8x8xf32>
    %cst_15 = arith.constant dense<0.000000e+00> : vector<8x8xf32>
    %28 = tpu.matmul %25, %26, %cst_15 {dimension_numbers = #tpu.dot_dimension_numbers<[1], [1], [0], [0], [0, 0, 1, 0], [], []>} : vector<8x8xf32>, vector<8x8xf32>, vector<8x8xf32> -> vector<8x8xf32>
    %cst_16 = arith.constant 0.353553385 : f32
    %29 = vector.broadcast %cst_16 : f32 to vector<8x8xf32>
    %30 = arith.mulf %29, %28 : vector<8x8xf32>
    %cst_17 = arith.constant dense<0xFF800000> : vector<8xf32>
    %31 = vector.multi_reduction <maximumf>, %30, %cst_17 [1] : vector<8x8xf32> to vector<8xf32>
    %32 = vector.shape_cast %31 : vector<8xf32> to vector<8x1xf32>
    %33 = vector.broadcast %32 : vector<8x1xf32> to vector<8x8xf32>
    %34 = arith.subf %30, %33 : vector<8x8xf32>
    %35 = math.exp %34 : vector<8x8xf32>
    %cst_18 = arith.constant dense<0.000000e+00> : vector<8xf32>
    %36 = vector.multi_reduction <add>, %35, %cst_18 [1] : vector<8x8xf32> to vector<8xf32>
    %37 = vector.shape_cast %36 : vector<8xf32> to vector<8x1xf32>
    %38 = tpu.reciprocal %37 {approx = true} : vector<8x1xf32> -> vector<8x1xf32>
    %39 = vector.broadcast %38 : vector<8x1xf32> to vector<8x8xf32>
    %40 = arith.mulf %35, %39 : vector<8x8xf32>
    %cst_19 = arith.constant dense<0.000000e+00> : vector<8x8xf32>
    %41 = tpu.matmul %40, %27, %cst_19 {dimension_numbers = #tpu.dot_dimension_numbers<[1], [0], [0], [1], [0, 0, 1, 1], [], []>} : vector<8x8xf32>, vector<8x8xf32>, vector<8x8xf32> -> vector<8x8xf32>
    %42 = vector.extract_strided_slice %5 {offsets = [0, 16], sizes = [8, 8], strides = [1, 1]} : vector<8x32xf32> to vector<8x8xf32>
    %43 = vector.extract_strided_slice %7 {offsets = [0, 16], sizes = [8, 8], strides = [1, 1]} : vector<8x64xf32> to vector<8x8xf32>
    %44 = vector.extract_strided_slice %7 {offsets = [0, 48], sizes = [8, 8], strides = [1, 1]} : vector<8x64xf32> to vector<8x8xf32>
    %cst_20 = arith.constant dense<0.000000e+00> : vector<8x8xf32>
    %45 = tpu.matmul %42, %43, %cst_20 {dimension_numbers = #tpu.dot_dimension_numbers<[1], [1], [0], [0], [0, 0, 1, 0], [], []>} : vector<8x8xf32>, vector<8x8xf32>, vector<8x8xf32> -> vector<8x8xf32>
    %cst_21 = arith.constant 0.353553385 : f32
    %46 = vector.broadcast %cst_21 : f32 to vector<8x8xf32>
    %47 = arith.mulf %46, %45 : vector<8x8xf32>
    %cst_22 = arith.constant dense<0xFF800000> : vector<8xf32>
    %48 = vector.multi_reduction <maximumf>, %47, %cst_22 [1] : vector<8x8xf32> to vector<8xf32>
    %49 = vector.shape_cast %48 : vector<8xf32> to vector<8x1xf32>
    %50 = vector.broadcast %49 : vector<8x1xf32> to vector<8x8xf32>
    %51 = arith.subf %47, %50 : vector<8x8xf32>
    %52 = math.exp %51 : vector<8x8xf32>
    %cst_23 = arith.constant dense<0.000000e+00> : vector<8xf32>
    %53 = vector.multi_reduction <add>, %52, %cst_23 [1] : vector<8x8xf32> to vector<8xf32>
    %54 = vector.shape_cast %53 : vector<8xf32> to vector<8x1xf32>
    %55 = tpu.reciprocal %54 {approx = true} : vector<8x1xf32> -> vector<8x1xf32>
    %56 = vector.broadcast %55 : vector<8x1xf32> to vector<8x8xf32>
    %57 = arith.mulf %52, %56 : vector<8x8xf32>
    %cst_24 = arith.constant dense<0.000000e+00> : vector<8x8xf32>
    %58 = tpu.matmul %57, %44, %cst_24 {dimension_numbers = #tpu.dot_dimension_numbers<[1], [0], [0], [1], [0, 0, 1, 1], [], []>} : vector<8x8xf32>, vector<8x8xf32>, vector<8x8xf32> -> vector<8x8xf32>
    %59 = vector.extract_strided_slice %5 {offsets = [0, 24], sizes = [8, 8], strides = [1, 1]} : vector<8x32xf32> to vector<8x8xf32>
    %60 = vector.extract_strided_slice %7 {offsets = [0, 24], sizes = [8, 8], strides = [1, 1]} : vector<8x64xf32> to vector<8x8xf32>
    %61 = vector.extract_strided_slice %7 {offsets = [0, 56], sizes = [8, 8], strides = [1, 1]} : vector<8x64xf32> to vector<8x8xf32>
    %cst_25 = arith.constant dense<0.000000e+00> : vector<8x8xf32>
    %62 = tpu.matmul %59, %60, %cst_25 {dimension_numbers = #tpu.dot_dimension_numbers<[1], [1], [0], [0], [0, 0, 1, 0], [], []>} : vector<8x8xf32>, vector<8x8xf32>, vector<8x8xf32> -> vector<8x8xf32>
    %cst_26 = arith.constant 0.353553385 : f32
    %63 = vector.broadcast %cst_26 : f32 to vector<8x8xf32>
    %64 = arith.mulf %63, %62 : vector<8x8xf32>
    %cst_27 = arith.constant dense<0xFF800000> : vector<8xf32>
    %65 = vector.multi_reduction <maximumf>, %64, %cst_27 [1] : vector<8x8xf32> to vector<8xf32>
    %66 = vector.shape_cast %65 : vector<8xf32> to vector<8x1xf32>
    %67 = vector.broadcast %66 : vector<8x1xf32> to vector<8x8xf32>
    %68 = arith.subf %64, %67 : vector<8x8xf32>
    %69 = math.exp %68 : vector<8x8xf32>
    %cst_28 = arith.constant dense<0.000000e+00> : vector<8xf32>
    %70 = vector.multi_reduction <add>, %69, %cst_28 [1] : vector<8x8xf32> to vector<8xf32>
    %71 = vector.shape_cast %70 : vector<8xf32> to vector<8x1xf32>
    %72 = tpu.reciprocal %71 {approx = true} : vector<8x1xf32> -> vector<8x1xf32>
    %73 = vector.broadcast %72 : vector<8x1xf32> to vector<8x8xf32>
    %74 = arith.mulf %69, %73 : vector<8x8xf32>
    %cst_29 = arith.constant dense<0.000000e+00> : vector<8x8xf32>
    %75 = tpu.matmul %74, %61, %cst_29 {dimension_numbers = #tpu.dot_dimension_numbers<[1], [0], [0], [1], [0, 0, 1, 1], [], []>} : vector<8x8xf32>, vector<8x8xf32>, vector<8x8xf32> -> vector<8x8xf32>
    %76 = tpu.concatenate %24, %41, %58, %75 in 1 : vector<8x8xf32>, vector<8x8xf32>, vector<8x8xf32>, vector<8x8xf32> -> vector<8x32xf32>
    %c0_30 = arith.constant 0 : index
    %c0_31 = arith.constant 0 : index
    %77 = vector.load %arg5[%c0_30, %c0_31] : memref<32x32xf32, #tpu.memory_space<vmem>>, vector<32x32xf32>
    %cst_32 = arith.constant dense<0.000000e+00> : vector<8x32xf32>
    %78 = tpu.matmul %76, %77, %cst_32 {dimension_numbers = #tpu.dot_dimension_numbers<[1], [0], [0], [1], [0, 0, 1, 1], [], []>} : vector<8x32xf32>, vector<32x32xf32>, vector<8x32xf32> -> vector<8x32xf32>
    %c0_33 = arith.constant 0 : index
    %c0_34 = arith.constant 0 : index
    %c0_35 = arith.constant 0 : index
    %79 = vector.load %arg6[%c0_33, %c0_34, %c0_35] : memref<1x8x32xf32, #tpu.memory_space<vmem>>, vector<1x8x32xf32>
    %80 = vector.shape_cast %79 : vector<1x8x32xf32> to vector<8x32xf32>
    %81 = vector.shape_cast %78 : vector<8x32xf32> to vector<1x8x32xf32>
    tpu.vector_store %arg6[%c0_33, %c0_34, %c0_35], %81 {strides = array<i32>} : memref<1x8x32xf32, #tpu.memory_space<vmem>>, vector<1x8x32xf32>,
    return
  }
  func.func @transform_0(%arg0: i32) -> (i32, i32, i32) {
    %c0_i32 = arith.constant 0 : i32
    %c0_i32_0 = arith.constant 0 : i32
    %c0_i32_1 = arith.constant 0 : i32
    return %arg0, %c0_i32, %c0_i32_0 : i32, i32, i32
  }
  func.func @transform_1(%arg0: i32) -> (i32, i32, i32) {
    %c0_i32 = arith.constant 0 : i32
    %c0_i32_0 = arith.constant 0 : i32
    %c0_i32_1 = arith.constant 0 : i32
    return %arg0, %c0_i32, %c0_i32_0 : i32, i32, i32
  }
  func.func @transform_2(%arg0: i32) -> (i32, i32) {
    %c0_i32 = arith.constant 0 : i32
    %c0_i32_0 = arith.constant 0 : i32
    %c0_i32_1 = arith.constant 0 : i32
    return %c0_i32, %c0_i32_0 : i32, i32
  }
  func.func @transform_3(%arg0: i32) -> (i32, i32) {
    %c0_i32 = arith.constant 0 : i32
    %c0_i32_0 = arith.constant 0 : i32
    %c0_i32_1 = arith.constant 0 : i32
    return %c0_i32, %c0_i32_0 : i32, i32
  }
  func.func @transform_4(%arg0: i32) -> (i32, i32) {
    %c0_i32 = arith.constant 0 : i32
    %c0_i32_0 = arith.constant 0 : i32
    %c0_i32_1 = arith.constant 0 : i32
    return %c0_i32, %c0_i32_0 : i32, i32
  }
  func.func @transform_5(%arg0: i32) -> (i32, i32, i32) {
    %c0_i32 = arith.constant 0 : i32
    %c0_i32_0 = arith.constant 0 : i32
    %c0_i32_1 = arith.constant 0 : i32
    return %arg0, %c0_i32, %c0_i32_0 : i32, i32, i32
  }
}

</mosaic_0001>

<bundles_post_ra>
// kernel: tpu_custom_call.1
= control target key start
LH: loop header
LB: loop body
LE: loop exit
PB: predicated region body
PF: predicated region fallthrough
CT: control target
= control target key end

     0   :  { %s2293_s0 = inlined_call_operand.hbm [shape: f32[2,8,32], index: 0, kind: input, shape index: {}]   ;;  %s2294_s1 = inlined_call_operand.hbm [shape: f32[2,8,32], index: 1, kind: input, shape index: {}]   ;;  %s2295_s2 = inlined_call_operand.hbm [shape: f32[32,32], index: 2, kind: input, shape index: {}]   ;;  %s2296_s3 = inlined_call_operand.hbm [shape: f32[32,64], index: 3, kind: input, shape index: {}]   ;;  %s2297_s4 = inlined_call_operand.hbm [shape: f32[32,32], index: 4, kind: input, shape index: {}]   ;;  %s2298_s5 = inlined_call_operand.hbm [shape: f32[2,8,32], index: 5, kind: output, shape index: {}]  }
   0x1   :  { %2303 = sst [smem:[#allocation17_spill]] %s2295_s2 }
   0x2   :  { %2304 = sst [smem:[#allocation18_spill]] %s2296_s3 }
   0x3   :  { %10 = vsyncpa [#allocation3], 0 }
   0x4   :  { %12 = vsyncpa [#allocation3 + $0x1], 0 }
   0x5   :  { %13 = vsyncpa [#allocation6], 0 }
   0x6   :  { %15 = vsyncpa [#allocation6 + $0x1], 0 }
   0x7   :  { %16 = vsyncpa [#allocation9], 0 }
   0x8   :  { %17 = vsyncpa [#allocation4], 0 }
   0x9   :  { %19 = vsyncpa [#allocation4 + $0x1], 0  ;;  %s1916_s18 = smov 0   ;;  %s1918_s19 = smov 0  }
   0xa   :  { %s1920_s20 = smov 0   ;;  %s1922_s21 = smov 0  }
   0xb LB: > { %s1937_s22 = sadd.s32 4294967295, %s1863_s21   ;;  %s1370_s23 = sadd.s32 4294967294, %s1863_s21   ;;  %s1863_s21 = sphi %s1922_s21, %s2327_s21   ;;  %s1859_s20 = sphi %s1920_s20, %s2326_s20   ;;  %s1855_s19 = sphi %s1918_s19, %s2325_s19   ;;  %s1851_s18 = sphi %s1916_s18, %s2324_s18  }
   0xc   : > { %p45_p0 = scmp.ne.s32.totalorder %s1855_s19, %s1851_s18  ;;  %p2299_p1 = scmp.eq.s32.totalorder %s1937_s22, 0 }
   0xd   : > { %p164_p3 = scmp.eq.s32.totalorder %s1370_s23, 1  ;;  %p1371_p5 = scmp.ge.s32.totalorder %s1863_s21, 1 }
   0xe   : > { %p1946_p4 = por %p2299_p1, %p45_p0  ;;  %p171_p7 = scmp.lt.s32.totalorder %s1863_s21, 3 }
   0xf   : > { %p1951_p6 = por %p164_p3, %p45_p0  ;;  %s1865_s27 = smov [#allocation7]  }
  0x10   : > { %s2305_s24 = scalar_select %p1946_p4, 1, 0 }
  0x11   : > { %s2306_s25 = scalar_select %p1951_p6, 1, 0 }
  0x12   : > { %p1956_p8 = pnand %p1371_p5, %p171_p7  ;;  %s183_s28 = sshll.u32 %s1865_s27, 4  ;;  %s1960_s28 = int_to_ptr.vmem [resolvable:$true] %s183_s28 }
  0x13   : > { %s1866_s30 = smov [#allocation8]   ;;  %s1867_s7 = smov [#allocation10]  }
  0x14   : > { %s2307_s26 = scalar_select %p1956_p8, 1, 0 }
  0x15   : > { %p1546_p9 = pneg %p1956_p8  ;;  %s196_s6 = sshll.u32 %s1866_s30, 4  ;;  %s1971_s6 = int_to_ptr.vmem [resolvable:$true] %s196_s6 }
  0x16   : > { %s1973_s8 = sshll.u32 %s1867_s7, 4  ;;  %s2309_s2 = sld [smem:[#allocation17_spill]]  ;;  %s210_s8 = int_to_ptr.vmem [resolvable:$true] %s1973_s8 }
  0x17   : > { %p1967_p11 = pnand %p1546_p9, %p2299_p1 }
  0x19   : > { %p1983_p13 = pneg %p1967_p11 }
  0x1c   : > { %s1641_s11 = scalar_lea.hbm %s2309_s2, 512 }
  0x1d   : > { %p1642_p12 = scmp.ne.s32.totalorder %s2309_s2, %s1641_s11  ;;  %p1648_p5 = scmp.lt.u32.totalorder %s1641_s11, %s2309_s2 }
  0x1f   : > { %p1644_p0 = pnand %p1983_p13, %p1642_p12 }
  0x21   : > { %p1645_p3 = pneg %p1644_p0 }
  0x23   : > { %p1650_p7 = pnand %p1648_p5, %p1645_p3 }
  0x25   : > { %1653 = shalt.err (!%p1650_p7)
}
  0x26   : > { %s1654_s17 = scalar_lea.vmem %s1960_s28, 512  ;;  %p1662_p2 = scmp.lt.s32.totalorder %s1960_s28, %s1960_s28 }
  0x27   : > { %p1655_p9 = scmp.ne.s32.totalorder %s1960_s28, %s1654_s17  ;;  %p1663_p6 = scmp.lt.s32.totalorder %s1654_s17, %s1654_s17 }
  0x29   : > { %p1657_p10 = pnand %p1655_p9, %p1983_p13  ;;  %p1664_p12 = por %p1663_p6, %p1662_p2 }
  0x2b   : > { %p1658_p1 = pneg %p1657_p10 }
  0x2d   : > { %p1665_p0 = pnand %p1664_p12, %p1658_p1 }
  0x2f   : > { %1668 = shalt.err (!%p1665_p0)
}
  0x30   : > { %s1868_s23 = smov 128   ;;  %s1869_s27 = smov 8  }
  0x31   : > { %1549 = dma.hbm_to_vmem [thread:$0]  (!%p1967_p11), %s2309_s2, 512, %s1960_s28, [#allocation6], %s1868_s23, %s1868_s23, %s1869_s27  }
  0x32   : > { %s2311_s3 = sld [smem:[#allocation18_spill]] }
  0x38   : > { %s1669_s11 = scalar_lea.hbm %s2311_s3, 512 }
  0x39   : > { %p1670_p1 = scmp.ne.s32.totalorder %s2311_s3, %s1669_s11  ;;  %p1676_p10 = scmp.lt.u32.totalorder %s1669_s11, %s2311_s3 }
  0x3b   : > { %p1672_p2 = pnand %p1670_p1, %p1983_p13 }
  0x3d   : > { %p1673_p6 = pneg %p1672_p2 }
  0x3f   : > { %p1678_p3 = pnand %p1676_p10, %p1673_p6 }
  0x41   : > { %1681 = shalt.err (!%p1678_p3)
}
  0x42   : > { %s1682_s28 = scalar_lea.vmem %s1971_s6, 512  ;;  %p1690_p12 = scmp.lt.s32.totalorder %s1971_s6, %s1971_s6 }
  0x43   : > { %p1683_p5 = scmp.ne.s32.totalorder %s1971_s6, %s1682_s28  ;;  %p1691_p0 = scmp.lt.s32.totalorder %s1682_s28, %s1682_s28 }
  0x45   : > { %p1685_p7 = pnand %p1683_p5, %p1983_p13  ;;  %p1692_p1 = por %p1691_p0, %p1690_p12 }
  0x47   : > { %p1686_p9 = pneg %p1685_p7 }
  0x49   : > { %p1693_p2 = pnand %p1692_p1, %p1686_p9 }
  0x4b   : > { %1696 = shalt.err (!%p1693_p2)
}
  0x4c   : > { %1552 = dma.hbm_to_vmem [thread:$0]  (!%p1967_p11), %s2311_s3, 512, %s1971_s6, [#allocation9], %s1868_s23, %s1868_s23, %s1869_s27  }
  0x4d   : > { %s1697_s10 = scalar_lea.hbm %s2297_s4, 512 }
  0x4e   : > { %p1698_p6 = scmp.ne.s32.totalorder %s2297_s4, %s1697_s10  ;;  %p1704_p5 = scmp.lt.u32.totalorder %s1697_s10, %s2297_s4 }
  0x50   : > { %p1700_p10 = pnand %p1698_p6, %p1983_p13 }
  0x52   : > { %p1701_p3 = pneg %p1700_p10 }
  0x54   : > { %p1706_p7 = pnand %p1704_p5, %p1701_p3 }
  0x56   : > { %1709 = shalt.err (!%p1706_p7)
}
  0x57   : > { %s1710_s16 = scalar_lea.vmem %s210_s8, 512  ;;  %p1718_p1 = scmp.lt.s32.totalorder %s210_s8, %s210_s8 }
  0x58   : > { %p1711_p9 = scmp.ne.s32.totalorder %s210_s8, %s1710_s16  ;;  %p1719_p2 = scmp.lt.s32.totalorder %s1710_s16, %s1710_s16 }
  0x5a   : > { %p1713_p12 = pnand %p1711_p9, %p1983_p13  ;;  %p1720_p4 = por %p1719_p2, %p1718_p1 }
  0x5c   : > { %p1714_p0 = pneg %p1713_p12 }
  0x5e   : > { %p1721_p8 = pnand %p1720_p4, %p1714_p0 }
  0x60   : > { %1724 = shalt.err (!%p1721_p8)
}
  0x61   : > { %1555 = dma.hbm_to_vmem [thread:$0]  (!%p1967_p11), %s2297_s4, 512, %s210_s8, [#allocation9], %s1868_s23, %s1868_s23, %s1869_s27  }
  0x62   : > { %s2056_s14 = sadd.s32 1, %s1863_s21   ;;  %s32_s17 = sadd.s32 1, %s1859_s20 }
  0x63   : > { %s29_s29 = ssub.s32 %s1863_s21, %s2056_s14  ;;  %p39_p8 = scmp.ne.s32.totalorder %s1859_s20, %s1855_s19 }
  0x64   : > { %p30_p4 = scmp.eq.s32.totalorder %s29_s29, 0  ;;  %p40_p13 = scmp.eq.s32.totalorder %s1863_s21, 0 }
  0x65   : > { %p1570_p6 = scmp.lt.s32.totalorder %s1863_s21, 2  ;;  %p2312_p3 = scmp.eq.s32.totalorder %s1937_s22, 1 }
  0x66   : > { %s2066_s30 = scalar_select %p30_p4, %s1859_s20, %s32_s17  }
  0x67   : > { %p41_p10 = por %p40_p13, %p39_p8  ;;  %p2070_p5 = por %p2312_p3, %p39_p8 }
  0x68   : > { %s223_s9 = sand.u32 1, %s1859_s20   ;;  %s1377_s10 = sshll.u32 %s1863_s21, 7 }
  0x69   : > { %s2313_s7 = scalar_select %p2070_p5, 1, 0 }
  0x6a   : > { %s2076_s8 = sshll.u32 %s223_s9, 3  ;;  %s2081_s11 = scalar_lea.hbm %s2293_s0, %s1377_s10 }
  0x6b   : > { %s227_s12 = scalar_lea.vmem [#allocation2], %s2076_s8  ;;  %p2084_p11 = pnand %p1570_p6, %p41_p10 }
  0x6c   : > { %s234_s13 = sshll.u32 %s227_s12, 4  ;;  %s2093_s28 = scalar_lea.hbm %s2294_s1, %s1377_s10  ;;  %s2088_s13 = int_to_ptr.vmem [resolvable:$true] %s234_s13 }
  0x6d   : > { %s224_s29 = scalar_lea.sflag [#allocation3], %s223_s9  ;;  %s1725_s17 = scalar_lea.hbm %s2081_s11, 128 }
  0x6e   : > { %p1726_p7 = scmp.ne.s32.totalorder %s2081_s11, %s1725_s17  ;;  %p1727_p9 = pneg %p2084_p11 }
  0x6f   : > { %s1730_s12 = scalar_lea.hbm %s2293_s0, 256  ;;  %p1731_p1 = scmp.lt.u32.totalorder %s2081_s11, %s2293_s0 }
  0x70   : > { %p1728_p12 = pnand %p1727_p9, %p1726_p7  ;;  %p1732_p2 = scmp.lt.u32.totalorder %s1730_s12, %s1725_s17 }
  0x71   : > { %p1734_p8 = scmp.lt.u32.totalorder %s1725_s17, %s2081_s11 }
  0x72   : > { %p1729_p0 = pneg %p1728_p12  ;;  %p1733_p4 = por %p1732_p2, %p1731_p1 }
  0x74   : > { %p1735_p13 = por %p1734_p8, %p1733_p4 }
  0x76   : > { %p1736_p6 = pnand %p1735_p13, %p1729_p0 }
  0x78   : > { %1739 = shalt.err (!%p1736_p6)
}
  0x79   : > { %s1740_s9 = scalar_lea.vmem %s2088_s13, 128  ;;  %s1870_s10 = smov [#allocation2]  }
  0x7a   : > { %p1741_p10 = scmp.ne.s32.totalorder %s2088_s13, %s1740_s9  ;;  %s1745_s16 = sshll.u32 %s1870_s10, 4  ;;  %s1746_s16 = int_to_ptr.vmem [resolvable:$false] %s1745_s16 }
  0x7b   : > { %s1747_s2 = scalar_lea.vmem %s1746_s16, 256  ;;  %p1748_p12 = scmp.lt.s32.totalorder %s2088_s13, %s1746_s16 }
  0x7c   : > { %p1743_p3 = pnand %p1741_p10, %p1727_p9  ;;  %p1749_p1 = scmp.lt.s32.totalorder %s1747_s2, %s1740_s9 }
  0x7e   : > { %p1744_p7 = pneg %p1743_p3  ;;  %p1750_p2 = por %p1749_p1, %p1748_p12 }
  0x80   : > { %p1751_p4 = pnand %p1750_p2, %p1744_p7 }
  0x82   : > { %1754 = shalt.err (!%p1751_p4)
}
  0x83   : > { %1559 = dma.hbm_to_vmem [thread:$0]  (!%p2084_p11), %s2081_s11, 128, %s2088_s13, %s224_s29  }
  0x84   : > { %s241_s3 = sand.u32 1, %s1863_s21   ;;  %s245_s6 = scalar_lea.vmem [#allocation5], %s2076_s8 }
  0x85   : > { %s252_s17 = sshll.u32 %s245_s6, 4  ;;  %s242_s23 = scalar_lea.sflag [#allocation6], %s241_s3  ;;  %s253_s17 = int_to_ptr.vmem [resolvable:$true] %s252_s17 }
  0x86   : > { %s1755_s27 = scalar_lea.hbm %s2093_s28, 128  ;;  %s1760_s10 = scalar_lea.hbm %s2294_s1, 256 }
  0x87   : > { %p1756_p0 = scmp.ne.s32.totalorder %s2093_s28, %s1755_s27  ;;  %p1761_p6 = scmp.lt.u32.totalorder %s2093_s28, %s2294_s1 }
  0x88   : > { %p1762_p10 = scmp.lt.u32.totalorder %s1760_s10, %s1755_s27  ;;  %p1764_p7 = scmp.lt.u32.totalorder %s1755_s27, %s2093_s28 }
  0x89   : > { %p1758_p8 = pnand %p1756_p0, %p1727_p9 }
  0x8a   : > { %p1763_p3 = por %p1762_p10, %p1761_p6 }
  0x8b   : > { %p1759_p13 = pneg %p1758_p8 }
  0x8c   : > { %p1765_p12 = por %p1764_p7, %p1763_p3 }
  0x8e   : > { %p1766_p1 = pnand %p1765_p12, %p1759_p13 }
  0x90   : > { %1769 = shalt.err (!%p1766_p1)
}
  0x91   : > { %s1770_s8 = scalar_lea.vmem %s253_s17, 128  ;;  %s1871_s11 = smov [#allocation5]  }
  0x92   : > { %p1771_p2 = scmp.ne.s32.totalorder %s253_s17, %s1770_s8  ;;  %s1775_s13 = sshll.u32 %s1871_s11, 4  ;;  %s1776_s13 = int_to_ptr.vmem [resolvable:$false] %s1775_s13 }
  0x93   : > { %s1777_s29 = scalar_lea.vmem %s1776_s13, 256  ;;  %p1778_p8 = scmp.lt.s32.totalorder %s253_s17, %s1776_s13 }
  0x94   : > { %p1773_p4 = pnand %p1771_p2, %p1727_p9  ;;  %p1779_p5 = scmp.lt.s32.totalorder %s1777_s29, %s1770_s8 }
  0x96   : > { %p1774_p0 = pneg %p1773_p4  ;;  %p1780_p6 = por %p1779_p5, %p1778_p8 }
  0x98   : > { %p1781_p10 = pnand %p1780_p6, %p1774_p0 }
  0x9a   : > { %1784 = shalt.err (!%p1781_p10)
}
  0x9b   : > { %1562 = dma.hbm_to_vmem [thread:$0]  (!%p2084_p11), %s2093_s28, 128, %s253_s17, %s242_s23  }
  0x9c   : > { %p2315_p13 = scmp.ne.s32.totalorder %s2307_s26, 0 }
  0x9d   : > { %s2144_s3 = sand.u32 (!%p2315_p13), 1, %s1855_s19   ;;  %p2316_p5 = scmp.ne.s32.totalorder (!%p2315_p13), %s2305_s24, 0 }
  0x9e   : > { %261 = sbr.rel (%p2315_p13) target bundleno = 1608 (0x648), region = 40  ;;  %s2147_s6 = sshll.u32 (!%p2315_p13), %s2144_s3, 3 }
  0x9f   : > { %s264_s27 = scalar_lea.sflag (!%p2315_p13), [#allocation3], %s2144_s3  ;;  %s267_s12 = scalar_lea.vmem (!%p2315_p13), [#allocation2], %s2147_s6 }
  0xa5   : > { %1830 = dma.done.wait (%p2316_p5), %s264_s27, 128  }
  0xa6   : > { %1832 = vsyncadd (%p2316_p5), %s264_s27, 4294967168  ;;  %s272_s26 = sand.u32 1, %s1937_s22   ;;  %s276_s28 = scalar_lea.vmem [#allocation5], %s2147_s6 }
  0xa7   : > { %s273_s15 = scalar_lea.sflag [#allocation6], %s272_s26 }
  0xa8   : > { %1834 = dma.done.wait (%p2316_p5), %s273_s15, 128  }
  0xa9   : > { %1836 = vsyncadd (%p2316_p5), %s273_s15, 4294967168  ;;  %p2317_p11 = scmp.eq.s32.totalorder %s1937_s22, 0 }
  0xab   : > { %1838 = dma.done.wait (%p2317_p11), [#allocation6], 512   ;;  %p2318_p9 = pmov %p2317_p11 }
  0xad   : > { %1840 = vsyncadd (%p2318_p9), [#allocation6], 4294966784  ;;  %p2319_p3 = pmov %p2318_p9 }
  0xaf   : > { %1842 = dma.done.wait (%p2319_p3), [#allocation9], 1024   ;;  %p2320_p7 = pmov %p2319_p3 }
  0xb0   : > { %v1872_v0 = vmov 0.0|0.0   ;;  %vm1873_vm0 = vmmov 0   ;;  %v1874_v1 = vmov 0.0   ;;  %v400_v2 = vld [vmem:[#allocation8] sm:$0xff]  ;;  %v401_v3 = vld [vmem:[#allocation8 + $0x8] sm:$0xff]  ;;  %v402_v7 = vld [vmem:[#allocation8 + $0x10] sm:$0xff] }
  0xb1   : > { %1844 = vsyncadd (%p2320_p7), [#allocation9], 4294966272  ;;  %1516 = vmatprep.subr.bf16.mxu1 %v1872_v0  ;;  %1510 = vmatprep.subr.bf16.mxu0 %v1872_v0  ;;  %v322_v4 = vld [vmem:[#allocation7] sm:$0xff]  ;;  %v1517_v5 = vpack.c.bf16 %v401_v3, %v400_v2  ;;  %v323_v6 = vld [vmem:[#allocation7 + $0x8] sm:$0xff]  ;;  %vm326_vm1 = vcmask 261120   ;;  %vm477_vm2 = vcmask 64512  }
  0xb2   : > { %1456 = vmatprep.mubr.msk.f32.mxu1 %vm1873_vm0, %v1874_v1  ;;  %1445 = vmatprep.mubr.msk.f32.mxu0 %vm1873_vm0, %v1874_v1  ;;  %v403_v8 = vld [vmem:[#allocation8 + $0x18] sm:$0xff]  ;;  %v1511_v9 = vpack.c.bf16 %v323_v6, %v322_v4  ;;  %v324_v10 = vld [vmem:[#allocation7 + $0x10] sm:$0xff]  ;;  %v320_v15 = vld [vmem:[%s267_s12] sm:$0xff]  ;;  %s1875_s24 = smov 112   ;;  %s1876_s17 = smov 120   ;;  %vm1153_vm3 = vcmask 130048  }
  0xb3   : > { %v325_v11 = vld [vmem:[#allocation7 + $0x18] sm:$0xff]  ;;  %1518 = vmatpush3.bf16.msra.mxu1 %v1517_v5  ;;  %v1520_v12 = vpack.c.bf16 %v403_v8, %v402_v7  ;;  %s1877_s23 = smov 104   ;;  %s1878_s9 = smov 96   ;;  %vm1155_vm4 = vcmask 195584  }
  0xb4   : > { %1512 = vmatpush3.bf16.msra.mxu0 %v1511_v9  ;;  %1519 = vmatprep.subr.bf16.mxu1 %v1872_v0  ;;  %v1514_v13 = vpack.c.bf16 %v325_v11, %v324_v10  ;;  %v321_v14 = vld [vmem:[%s276_s28] sm:$0xff]  ;;  %s1879_s10 = smov 80   ;;  %s1880_s16 = smov 72  }
  0xb5   : > { %1513 = vmatprep.subr.bf16.mxu0 %v1872_v0  ;;  %s1881_s2 = smov 88   ;;  %s1882_s8 = smov 8  }
  0xb6   : > { %s1883_s11 = smov 16   ;;  %s1884_s13 = smov 24  }
  0xb7   : > { %1521 = vmatpush3.bf16.msra.mxu1 %v1520_v12  ;;  %s1403_s29 = sshll.u32 %s1937_s22, 7  ;;  %s319_s27 = scalar_lea.vmem [#allocation11], %s2147_s6 }
  0xb8   : > { %1515 = vmatpush3.bf16.msra.mxu0 %v1514_v13  ;;  %1459 = vmatprep.subr.mxu1 %v1874_v1  ;;  %s1249_s12 = sshll.u32 %s319_s27, 4  ;;  %s2248_s28 = scalar_lea.hbm %s2298_s5, %s1403_s29  ;;  %s2250_s12 = int_to_ptr.vmem [resolvable:$true] %s1249_s12 }
  0xb9   : > { %1469 = vmatprep.subr.mxu0 %v1874_v1  ;;  %p2321_p1 = scmp.ne.s32.totalorder %s2313_s7, 0  ;;  %s1885_s22 = smov [#allocation11]  }
  0xba   : > { %1457 = vmatmul.mubr.msk.f32.vlgmr.msra.gmra.mrb[0].mxu1 %vm326_vm1, %v321_v14  ;;  %s1789_s6 = sshll.u32 %s1885_s22, 4  ;;  %s1790_s6 = int_to_ptr.vmem [resolvable:$false] %s1789_s6 }
  0xbb   : > { %1446 = vmatmul.mubr.msk.f32.vlgmr.msra.gmra.mrb[0].mxu0 %vm326_vm1, %v320_v15  ;;  %1461 = vmatprep.mubr.msk.f32.mxu1 %vm1873_vm0, %v1874_v1  ;;  %p1792_p0 = scmp.lt.s32.totalorder %s2250_s12, %s1790_s6 }
  0xbc   : > { %1471 = vmatprep.mubr.msk.f32.mxu0 %vm1873_vm0, %v1874_v1 }
 0x18d   : > { %v2189_v16 = vpop.f32.mrb[0].mxu1 }
 0x18e   : > { %810 = vrot.lane.b32.xlu1 %v2189_v16, %s1875_s24  ;;  %644 = vrot.lane.b32.xlu0 %v2189_v16, %s1876_s17  ;;  %v1458_v17 = vpop.f32.mrb[1].mxu1  ;;  %v396_v18 = vpop.f32.mrb[0].mxu0 }
 0x18f   : > { %1460 = vmatpush3.xpose.msk.msra.mxu1 %vm477_vm2, %v2189_v16  ;;  %v1447_v19 = vpop.f32.mrb[1].mxu0 }
 0x190   : > { %1464 = vmatprep.subr.mxu1 %v1874_v1  ;;  %v1158_v19 = vld [vmem:[#allocation10 + $0x8] sm:$0xff] }
 0x192   : > { %1462 = vmatmul.mubr.msk.f32.vlgmr.msra.gmra.mrb[2].mxu1 %vm477_vm2, %v396_v18  ;;  %808 = vrot.lane.b32.xlu1 %v396_v18, %s1875_s24  ;;  %s1236_s24 = scalar_lea.sflag [#allocation4], %s2144_s3 }
 0x193   : > { %642 = vrot.lane.b32.xlu0 %v396_v18, %s1876_s17  ;;  %1466 = vmatprep.mubr.msk.f32.mxu1 %vm1873_vm0, %v1874_v1  ;;  %s1785_s17 = scalar_lea.vmem %s2250_s12, 128 }
 0x194   : > { %p1786_p12 = scmp.ne.s32.totalorder %s2250_s12, %s1785_s17 }
 0x196   : > { %974 = vrot.lane.b32.xlu1 %v396_v18, %s1877_s23  ;;  %v1157_v18 = vld [vmem:[#allocation10] sm:$0xff]  ;;  %p1787_p2 = pnand %p1786_p12, %p2321_p1 }
 0x197   : > { %976 = vrot.lane.b32.xlu0 %v2189_v16, %s1877_s23  ;;  %s1791_s23 = scalar_lea.vmem %s1790_s6, 256 }
 0x198   : > { %p1788_p4 = pneg %p1787_p2  ;;  %p1793_p8 = scmp.lt.s32.totalorder %s1791_s23, %s1785_s17 }
 0x19a   : > { %p1794_p6 = por %p1793_p8, %p1792_p0 }
 0x19c   : > { %p1795_p10 = pnand %p1794_p6, %p1788_p4 }
 0x200   : > { %v645_v20 = vpop.permute.xlu0 %644  ;;  %v811_v21 = vpop.permute.xlu1 %810 }
 0x201   : > { %1470 = vmatpush3.xpose.msk.msra.mxu0 %vm477_vm2, %v645_v20  ;;  %v1523_v20 = vpack.c.bf16 %v1158_v19, %v1157_v18 }
 0x202   : > { %1479 = vmatprep.subr.mxu0 %v1874_v1 }
 0x204   : > { %v809_v23 = vpop.permute.xlu1 %808 }
 0x205   : > { %v643_v22 = vpop.permute.xlu0 %642 }
 0x206   : > { %1472 = vmatmul.mubr.msk.f32.vlgmr.msra.gmra.mrb[2].mxu0 %vm477_vm2, %v643_v22  ;;  %v1160_v22 = vld [vmem:[#allocation10 + $0x18] sm:$0xff] }
 0x207   : > { %1480 = vmatpush3.xpose.msk.msra.mxu0 %vm477_vm2, %v811_v21  ;;  %1481 = vmatprep.mubr.msk.f32.mxu0 %vm1873_vm0, %v1874_v1  ;;  %v1159_v21 = vld [vmem:[#allocation10 + $0x10] sm:$0xff] }
 0x208   : > { %1489 = vmatprep.subr.mxu0 %v1874_v1  ;;  %v975_v25 = vpop.permute.xlu1 %974 }
 0x209   : > { %v977_v24 = vpop.permute.xlu0 %976 }
 0x20a   : > { %1482 = vmatmul.mubr.msk.f32.vlgmr.msra.gmra.mrb[4].mxu0 %vm477_vm2, %v809_v23  ;;  %v1526_v23 = vpack.c.bf16 %v1160_v22, %v1159_v21 }
 0x20b   : > { %1490 = vmatpush3.xpose.msk.msra.mxu0 %vm477_vm2, %v977_v24  ;;  %1491 = vmatprep.mubr.msk.f32.mxu0 %vm1873_vm0, %v1874_v1 }
 0x20c   : > { %1522 = vmatprep.subr.bf16.mxu0 %v1872_v0 }
 0x20e   : > { %1492 = vmatmul.mubr.msk.f32.vlgmr.msra.gmra.mrb[6].mxu0 %vm477_vm2, %v975_v25 }
 0x20f   : > { %1507 = vmatprep.mubr.msk.f32.mxu0 %vm1873_vm0, %v1874_v1  ;;  %1524 = vmatpush3.bf16.msra.mxu0 %v1523_v20 }
 0x210   : > { %1525 = vmatprep.subr.bf16.mxu0 %v1872_v0 }
 0x213   : > { %1527 = vmatpush3.bf16.msra.mxu0 %v1526_v23 }
 0x265   : > { %v550_v26 = vpop.f32.mrb[2].mxu1 }
 0x266   : > { %v554_v27 = vmul.f32 0.35355338, %v550_v26  ;;  %v1463_v28 = vpop.f32.mrb[3].mxu1 }
 0x268   : > { %v555_v29 = vsel %vm477_vm2, %v554_v27, -inf }
 0x269   : > { %556 = vmax.xlane.f32.xlu0 %v555_v29 }
 0x2d9   : > { %v716_v30 = vpop.f32.mrb[2].mxu0 }
 0x2da   : > { %v720_v31 = vmul.f32 0.35355338, %v716_v30  ;;  %v1473_v32 = vpop.f32.mrb[3].mxu0 }
 0x2dc   : > { %v721_v33 = vsel %vm477_vm2, %v720_v31, -inf }
 0x2dd   : > { %722 = vmax.xlane.f32.xlu1 %v721_v33  ;;  %v882_v34 = vpop.f32.mrb[4].mxu0 }
 0x2de   : > { %v886_v35 = vmul.f32 0.35355338, %v882_v34  ;;  %v1483_v36 = vpop.f32.mrb[5].mxu0 }
 0x2e0   : > { %v887_v37 = vsel %vm477_vm2, %v886_v35, -inf }
 0x2e1   : > { %888 = vmax.xlane.f32.xlu0 %v887_v37  ;;  %v1048_v38 = vpop.f32.mrb[6].mxu0 }
 0x2e2   : > { %v1052_v39 = vmul.f32 0.35355338, %v1048_v38  ;;  %v1493_v40 = vpop.f32.mrb[7].mxu0 }
 0x2e4   : > { %v1053_v41 = vsel %vm477_vm2, %v1052_v39, -inf }
 0x2e5   : > { %1054 = vmax.xlane.f32.xlu0 %v1053_v41 }
 0x2ee   : > { %566 = vrot.lane.b32.xlu1 %v2189_v16, %s1878_s9 }
 0x2f6   : > { %v557_v42 = vpop.xlane.xlu0 %556 }
 0x2f7   : > { %v558_v43 = vsub.f32 %v554_v27, %v557_v42 }
 0x2f9   : > { %v559_v44 = vmul.f32 1.442695, %v558_v43 }
 0x2fb   : > { %1625 = vpow2.f32 %v559_v44 }
 0x305   : > { %v1626_v45 = vpop.eup %1625 }
 0x306   : > { %v561_v46 = vsel %vm477_vm2, %v1626_v45, 0.0 }
 0x312   : > { %562 = vadd.xlane.f32.xlu1 %v561_v46 }
 0x36a   : > { %v723_v47 = vpop.xlane.xlu1 %722 }
 0x36b   : > { %v724_v48 = vsub.f32 %v720_v31, %v723_v47 }
 0x36d   : > { %v725_v49 = vmul.f32 1.442695, %v724_v48 }
 0x36e   : > { %v567_v50 = vpop.permute.xlu1 %566  ;;  %v889_v51 = vpop.xlane.xlu0 %888 }
 0x36f   : > { %1627 = vpow2.f32 %v725_v49  ;;  %v890_v52 = vsub.f32 %v886_v35, %v889_v51  ;;  %1465 = vmatpush3.msra.mxu1 %v567_v50 }
 0x370   : > { %1474 = vmatprep.subr.mxu1 %v1874_v1 }
 0x371   : > { %v891_v53 = vmul.f32 1.442695, %v890_v52 }
 0x372   : > { %v1055_v54 = vpop.xlane.xlu0 %1054 }
 0x373   : > { %1629 = vpow2.f32 %v891_v53  ;;  %v1056_v55 = vsub.f32 %v1052_v39, %v1055_v54 }
 0x375   : > { %v1057_v56 = vmul.f32 1.442695, %v1056_v55 }
 0x377   : > { %1631 = vpow2.f32 %v1057_v56 }
 0x379   : > { %v1628_v57 = vpop.eup %1627 }
 0x37a   : > { %v727_v58 = vsel %vm477_vm2, %v1628_v57, 0.0 }
 0x37b   : > { %728 = vadd.xlane.f32.xlu0 %v727_v58 }
 0x37d   : > { %v1630_v59 = vpop.eup %1629 }
 0x37e   : > { %v893_v60 = vsel %vm477_vm2, %v1630_v59, 0.0 }
 0x37f   : > { %894 = vadd.xlane.f32.xlu1 %v893_v60 }
 0x381   : > { %v1632_v61 = vpop.eup %1631 }
 0x382   : > { %v1059_v62 = vsel %vm477_vm2, %v1632_v61, 0.0 }
 0x383   : > { %1060 = vadd.xlane.f32.xlu0 %v1059_v62 }
 0x390   : > { %898 = vrot.lane.b32.xlu1 %v2189_v16, %s1879_s10 }
 0x394   : > { %1064 = vrot.lane.b32.xlu1 %v2189_v16, %s1880_s16 }
 0x399   : > { %732 = vrot.lane.b32.xlu0 %v2189_v16, %s1881_s2 }
 0x39f   : > { %v563_v63 = vpop.xlane.xlu1 %562 }
 0x3a0   : > { %1633 = vrcp.f32 %v563_v63 }
 0x3aa   : > { %v1634_v2 = vpop.eup %1633 }
 0x3ab   : > { %v565_v3 = vmul.f32 %v1634_v2, %v1626_v45 }
 0x3ad   : > { %1467 = vmatmul.mubr.msk.f32.vlgmr.msra.gmra.mrb[4].mxu1 %vm477_vm2, %v565_v3 }
 0x3ae   : > { %1476 = vmatprep.mubr.msk.f32.mxu1 %vm1873_vm0, %v1874_v1 }
 0x408   : > { %v729_v4 = vpop.xlane.xlu0 %728 }
 0x409   : > { %1635 = vrcp.f32 %v729_v4 }
 0x40c   : > { %v895_v5 = vpop.xlane.xlu1 %894 }
 0x40d   : > { %1637 = vrcp.f32 %v895_v5 }
 0x410   : > { %v1061_v6 = vpop.xlane.xlu0 %1060  ;;  %v899_v9 = vpop.permute.xlu1 %898 }
 0x411   : > { %1639 = vrcp.f32 %v1061_v6 }
 0x413   : > { %v1636_v7 = vpop.eup %1635 }
 0x414   : > { %v731_v8 = vmul.f32 %v1636_v7, %v1628_v57  ;;  %v733_v10 = vpop.permute.xlu0 %732  ;;  %v1065_v13 = vpop.permute.xlu1 %1064 }
 0x415   : > { %1475 = vmatpush3.msra.mxu1 %v733_v10 }
 0x416   : > { %1477 = vmatmul.mubr.msk.f32.vlgmr.msra.gmra.mrb[6].mxu1 %vm477_vm2, %v731_v8  ;;  %1484 = vmatprep.subr.mxu1 %v1874_v1 }
 0x417   : > { %v1638_v11 = vpop.eup %1637  ;;  %1485 = vmatpush3.msra.mxu1 %v899_v9  ;;  %1486 = vmatprep.mubr.msk.f32.mxu1 %vm1873_vm0, %v1874_v1 }
 0x418   : > { %v897_v12 = vmul.f32 %v1638_v11, %v1630_v59  ;;  %1494 = vmatprep.subr.mxu1 %v1874_v1 }
 0x41a   : > { %1487 = vmatmul.mubr.msk.f32.vlgmr.msra.gmra.mrb[8].mxu1 %vm477_vm2, %v897_v12 }
 0x41b   : > { %v1640_v14 = vpop.eup %1639  ;;  %1495 = vmatpush3.msra.mxu1 %v1065_v13  ;;  %1496 = vmatprep.mubr.msk.f32.mxu1 %vm1873_vm0, %v1874_v1 }
 0x41c   : > { %v1063_v15 = vmul.f32 %v1640_v14, %v1632_v61 }
 0x41e   : > { %1497 = vmatmul.mubr.msk.f32.vlgmr.msra.gmra.mrb[10].mxu1 %vm477_vm2, %v1063_v15 }
 0x480   : > { %v638_v16 = vpop.f32.mrb[4].mxu1 }
 0x481   : > { %v1468_v17 = vpop.f32.mrb[5].mxu1 }
 0x4e9   : > { %v804_v24 = vpop.f32.mrb[6].mxu1 }
 0x4ea   : > { %1141 = vrot.lane.b32.xlu0 %v804_v24, %s1882_s8  ;;  %v1478_v25 = vpop.f32.mrb[7].mxu1 }
 0x4ed   : > { %v970_v1 = vpop.f32.mrb[8].mxu1 }
 0x4ee   : > { %1145 = vrot.lane.b32.xlu1 %v970_v1, %s1883_s11  ;;  %v1488_v26 = vpop.f32.mrb[9].mxu1 }
 0x4f1   : > { %v1136_v27 = vpop.f32.mrb[10].mxu1 }
 0x4f2   : > { %1149 = vrot.lane.b32.xlu0 %v1136_v27, %s1884_s13  ;;  %v1498_v28 = vpop.f32.mrb[11].mxu1 }
 0x55c   : > { %v1142_v29 = vpop.permute.xlu0 %1141 }
 0x55d   : > { %v1152_v30 = vsel %vm477_vm2, %v638_v16, %v1142_v29 }
 0x560   : > { %v1146_v0 = vpop.permute.xlu1 %1145 }
 0x561   : > { %v1154_v31 = vsel %vm1153_vm3, %v1152_v30, %v1146_v0 }
 0x564   : > { %v1150_v32 = vpop.permute.xlu0 %1149 }
 0x565   : > { %v1156_v33 = vsel %vm1155_vm4, %v1154_v31, %v1150_v32 }
 0x566   : > { %1508 = vmatmul.mubr.msk.f32.vlgmr.msra.gmra.mrb[8].mxu0 %vm326_vm1, %v1156_v33 }
 0x639   : > { %v1230_v34 = vpop.f32.mrb[8].mxu0 }
 0x63a   : > { %1234 = vst.msk [vmem:[%s319_s27] sm:$0xff] %vm326_vm1, %v1230_v34  ;;  %v1509_v35 = vpop.f32.mrb[9].mxu0 }
 0x63b   : > { %1798 = shalt.err (!%p1795_p10)
}
 0x63c   : > { %s1799_s3 = scalar_lea.hbm %s2248_s28, 128  ;;  %s1803_s16 = scalar_lea.hbm %s2298_s5, 256 }
 0x63d   : > { %p1800_p13 = scmp.ne.s32.totalorder %s2248_s28, %s1799_s3  ;;  %p1804_p9 = scmp.lt.u32.totalorder %s2248_s28, %s2298_s5 }
 0x63e   : > { %p1805_p3 = scmp.lt.u32.totalorder %s1803_s16, %s1799_s3  ;;  %p1807_p12 = scmp.lt.u32.totalorder %s1799_s3, %s2248_s28 }
 0x63f   : > { %p1801_p5 = pnand %p1800_p13, %p2321_p1 }
 0x640   : > { %p1806_p7 = por %p1805_p3, %p1804_p9 }
 0x641   : > { %p1802_p11 = pneg %p1801_p5 }
 0x642   : > { %p1808_p2 = por %p1807_p12, %p1806_p7 }
 0x644   : > { %p1809_p4 = pnand %p1808_p2, %p1802_p11 }
 0x646   : > { %1812 = shalt.err (!%p1809_p4)
}
 0x647   : > { %1544 = dma.vmem_to_hbm [thread:$0]  (%p2321_p1), %s2250_s12, 128, %s2248_s28, %s1236_s24  }
 0x648 PF: > { %s1261_s11 = sand.u32 1, %s1851_s18   ;;  %p2322_p0 = scmp.ne.s32.totalorder %s2306_s25, 0 }
 0x649   : > { %p2323_p8 = scmp.ge.s32.totalorder %s1863_s21, 2  ;;  %s1262_s13 = scalar_lea.sflag [#allocation4], %s1261_s11 }
 0x64b   : > { %p1564_p6 = pnand %p2323_p8, %p2322_p0 }
 0x64d   : > { %1846 = dma.done.wait (!%p1564_p6), %s1262_s13, 128  }
 0x64e   : > { %1848 = vsyncadd (!%p1564_p6), %s1262_s13, 4294967168  ;;  %p22_p10 = scmp.ge.s32.totalorder %s2056_s14, 4   ;;  %s2324_s18 = smov %s1855_s19 }
 0x64f   : > { %s2325_s19 = smov %s1859_s20  ;;  %s2326_s20 = smov %s2066_s30 }
 0x650   : > { %s2327_s21 = smov %s2056_s14  ;;  %24 = sbr.rel (!%p22_p10) target bundleno = 11 (0xb), region = 110 }
 0x657   :  { %1267 = vsyncpa [#allocation3], 1 }
 0x658   :  { %1269 = vsyncpa [#allocation3 + $0x1], 1 }
 0x659   :  { %1270 = vsyncpa [#allocation6], 1 }
 0x65a   :  { %1272 = vsyncpa [#allocation6 + $0x1], 1 }
 0x65b   :  { %1273 = vsyncpa [#allocation9], 1 }
 0x65c   :  { %1274 = vsyncpa [#allocation4], 1 }
 0x65d   :  { %1276 = vsyncpa [#allocation4 + $0x1], 1 }

</bundles_post_ra>
